<compile_context>
chip_gen: v7x
topology: tpu7x:2x2x1
jax: 0.10.0
libtpu: 0.0.40
codegen_flags: <defaults>
</compile_context>

<pallas_src>
import jax
import jax.numpy as jnp
from jax import lax
from jax.experimental import pallas as pl
from jax.experimental.pallas import tpu as pltpu


LANES = 128
SUBLANES = 8
GROUP = SUBLANES * LANES  # 1024 elements per (8, 128) vreg group


def _make_stats_kernel(d, g_block, needs_mask):
    """Build the per-(sample, feature-tile) reduction kernel."""

    def kernel(x_ref, t_ref, out_ref):
        k = pl.program_id(1)

        # Output block index only depends on the sample axis, so it stays
        # resident across the feature-tile (reduction) axis: zero at k == 0,
        # accumulate afterwards.
        @pl.when(k == 0)
        def _():
            out_ref[...] = jnp.zeros_like(out_ref)

        x = x_ref[0].astype(jnp.float32)  # (g_block, 8, 128)
        t = t_ref[0].astype(jnp.float32)

        # Shared transcendentals: e = exp(-|x|) feeds both the stable BCE
        # log-term and the sigmoid (no second exp on the single EUP slot).
        e = jnp.exp(-jnp.abs(x))
        bce_elem = jnp.maximum(x, 0.0) - x * t + jnp.log1p(e)
        r = 1.0 / (1.0 + e)                     # sigmoid(|x|), exact reciprocal
        sig = jnp.where(x >= 0.0, r, e * r)     # sigmoid(x)

        if needs_mask:
            # Feature tail was zero-padded in the wrapper.  Padding already
            # contributes 0 to t and sig*t, but contributes log(2) to the BCE
            # sum and 0.5 to the sigmoid sum, so mask those two exactly.
            shp = (g_block, SUBLANES, LANES)
            g_iota = lax.broadcasted_iota(jnp.int32, shp, 0)
            s_iota = lax.broadcasted_iota(jnp.int32, shp, 1)
            l_iota = lax.broadcasted_iota(jnp.int32, shp, 2)
            fidx = ((k * g_block + g_iota) * SUBLANES + s_iota) * LANES + l_iota
            valid = fidx < d
            bce_elem = jnp.where(valid, bce_elem, 0.0)
            sig = jnp.where(valid, sig, 0.0)

        # Fold the group axis with pure VPU adds; cross-lane reduction of the
        # (8, 128) slabs is deferred to the tiny JAX epilogue.
        out_ref[0, 0] += jnp.sum(bce_elem, axis=0)
        out_ref[0, 1] += jnp.sum(sig * t, axis=0)
        out_ref[0, 2] += jnp.sum(sig, axis=0)
        out_ref[0, 3] += jnp.sum(t, axis=0)

    return kernel


def bce_dice_loss(logits, targets, *, target_block_bytes=2 << 20):
    """JAX/Pallas equivalent of BCEDiceLoss.forward(input, target)."""
    assert logits.shape == targets.shape
    n = logits.shape[0]
    d = 1
    for s in logits.shape[1:]:
        d *= s

    # Flatten; keep the HBM dtype (cast to f32 happens inside the kernel).
    x = logits.reshape(n, d)
    t = targets.reshape(n, d)

    g_total = pl.cdiv(d, GROUP)
    # Block sized off the f32 compute footprint (~2 MiB/input/step) so the
    # in-kernel temporaries + double-buffered input blocks stay well inside
    # VMEM on every generation (incl. v7x's 64 MiB) while DMAs are near
    # roofline.
    g_target = max(1, target_block_bytes // (GROUP * 4))
    g_block = min(g_target, g_total)
    kt = pl.cdiv(g_total, g_block)
    g_pad = kt * g_block
    d_pad = g_pad * GROUP
    needs_mask = d_pad != d

    if needs_mask:
        pad = d_pad - d
        x = jnp.pad(x, ((0, 0), (0, pad)))
        t = jnp.pad(t, ((0, 0), (0, pad)))

    # (N, D_pad) -> (N, G, 8, 128): sublane-dense tiles independent of N.
    x = x.reshape(n, g_pad, SUBLANES, LANES)
    t = t.reshape(n, g_pad, SUBLANES, LANES)

    kernel = _make_stats_kernel(d, g_block, needs_mask)

    stats = pl.pallas_call(
        kernel,
        out_shape=jax.ShapeDtypeStruct((n, 4, SUBLANES, LANES), jnp.float32),
        grid_spec=pltpu.PrefetchScalarGridSpec(
            num_scalar_prefetch=0,
            grid=(n, kt),
            in_specs=[
                pl.BlockSpec((1, g_block, SUBLANES, LANES),
                             lambda i, k: (i, k, 0, 0)),
                pl.BlockSpec((1, g_block, SUBLANES, LANES),
                             lambda i, k: (i, k, 0, 0)),
            ],
            out_specs=pl.BlockSpec((1, 4, SUBLANES, LANES),
                                   lambda i, k: (i, 0, 0, 0)),
        ),
        compiler_params=pltpu.CompilerParams(
            dimension_semantics=("parallel", "arbitrary"),
            vmem_limit_bytes=48 * 1024 * 1024,
        ),
    )(x, t)

    totals = jnp.sum(stats, axis=(2, 3))  # (N, 4)
    bce_sum = totals[:, 0]
    inter_sum = totals[:, 1]
    inp_sum = totals[:, 2]
    tgt_sum = totals[:, 3]

    smooth = 1e-05
    bce = jnp.sum(bce_sum) / (n * d)  # F.binary_cross_entropy_with_logits mean
    dice = (2.0 * inter_sum + smooth) / (inp_sum + tgt_sum + smooth)
    dice = 1.0 - jnp.sum(dice) / n
    return 0.5 * bce + dice


def _reference(logits, targets):
    """Pure-JAX reference mirroring the PyTorch forward exactly."""
    x = logits.astype(jnp.float32)
    t = targets.astype(jnp.float32)
    bce = jnp.mean(jnp.maximum(x, 0.0) - x * t + jnp.log1p(jnp.exp(-jnp.abs(x))))
    smooth = 1e-05
    n = x.shape[0]
    xi = jax.nn.sigmoid(x).reshape(n, -1)
    ti = t.reshape(n, -1)
    inter = jnp.sum(xi * ti, axis=1)
    dice = (2.0 * inter + smooth) / (jnp.sum(xi, axis=1) + jnp.sum(ti, axis=1) + smooth)
    dice = 1.0 - jnp.sum(dice) / n
    return 0.5 * bce + dice


def _check(shape, key, **kwargs):
    k1, k2 = jax.random.split(key)
    logits = jax.random.normal(k1, shape, jnp.float32)
    targets = (jax.random.uniform(k2, shape) > 0.5).astype(jnp.float32)
    loss = jax.jit(lambda a, b: bce_dice_loss(a, b, **kwargs))(logits, targets)
    jax.block_until_ready(loss)
    ref = _reference(logits, targets)
    assert jnp.allclose(loss, ref, rtol=1e-5, atol=1e-5), (shape, loss, ref)


if __name__ == "__main__":
    key = jax.random.PRNGKey(0)
    keys = jax.random.split(key, 3)

    # Main NCHW case, as the PyTorch module expects.
    _check((2, 4, 16, 16), keys[0])
    # Feature dim not a multiple of the (8,128) group: exercises the tail mask.
    _check((2, 3, 15, 15), keys[1])
    # Force multiple feature tiles (kt > 1): exercises the resident accumulator.
    _check((2, 4, 32, 32), keys[2], target_block_bytes=8 * 1024)

    print("KERNEL_OK")
</pallas_src>

<mosaic_0001>
module attributes {stable_mosaic.version = 11 : i64} {
  func.func @kernel(%arg0: i32, %arg1: i32, %arg2: memref<1x1x8x128xf32, #tpu.memory_space<vmem>>, %arg3: memref<1x1x8x128xf32, #tpu.memory_space<vmem>>, %arg4: memref<1x4x8x128xf32, #tpu.memory_space<vmem>>) attributes {dimension_semantics = [#tpu.dimension_semantics<parallel>, #tpu.dimension_semantics<arbitrary>], iteration_bounds = array<i64: 2, 1>, scalar_prefetch = 0 : i64, scratch_operands = 0 : i64, tpu.core_type = #tpu.core_type<tc>, window_params = [{transform_indices = @transform_0, window_bounds = array<i64: 1, 1, 8, 128>}, {transform_indices = @transform_1, window_bounds = array<i64: 1, 1, 8, 128>}, {transform_indices = @transform_2, window_bounds = array<i64: 1, 4, 8, 128>}]} {
    %c0_i32 = arith.constant 0 : i32
    %0 = arith.cmpi eq, %arg1, %c0_i32 : i32
    %1 = arith.extui %0 : i1 to i32
    %c0_i32_0 = arith.constant 0 : i32
    %2 = arith.cmpi ne, %1, %c0_i32_0 : i32
    scf.if %2 {
      %cst_45 = arith.constant 0.000000e+00 : f32
      %54 = vector.broadcast %cst_45 : f32 to vector<1x4x8x128xf32>
      %c0_46 = arith.constant 0 : index
      %c0_47 = arith.constant 0 : index
      %c0_48 = arith.constant 0 : index
      %c0_49 = arith.constant 0 : index
      %55 = vector.load %arg4[%c0_46, %c0_47, %c0_48, %c0_49] : memref<1x4x8x128xf32, #tpu.memory_space<vmem>>, vector<1x4x8x128xf32>
      tpu.vector_store %arg4[%c0_46, %c0_47, %c0_48, %c0_49], %54 {strides = array<i32>} : memref<1x4x8x128xf32, #tpu.memory_space<vmem>>, vector<1x4x8x128xf32>,
    } else {
    }
    %c0 = arith.constant 0 : index
    %c0_1 = arith.constant 0 : index
    %c0_2 = arith.constant 0 : index
    %c0_3 = arith.constant 0 : index
    %3 = vector.load %arg2[%c0, %c0_1, %c0_2, %c0_3] : memref<1x1x8x128xf32, #tpu.memory_space<vmem>>, vector<1x1x8x128xf32>
    %4 = vector.shape_cast %3 : vector<1x1x8x128xf32> to vector<1x8x128xf32>
    %c0_4 = arith.constant 0 : index
    %c0_5 = arith.constant 0 : index
    %c0_6 = arith.constant 0 : index
    %c0_7 = arith.constant 0 : index
    %5 = vector.load %arg3[%c0_4, %c0_5, %c0_6, %c0_7] : memref<1x1x8x128xf32, #tpu.memory_space<vmem>>, vector<1x1x8x128xf32>
    %6 = vector.shape_cast %5 : vector<1x1x8x128xf32> to vector<1x8x128xf32>
    %7 = math.absf %4 : vector<1x8x128xf32>
    %cst = arith.constant 0.000000e+00 : f32
    %8 = vector.broadcast %cst : f32 to vector<1x8x128xf32>
    %9 = arith.subf %8, %7 : vector<1x8x128xf32>
    %10 = math.exp %9 : vector<1x8x128xf32>
    %cst_8 = arith.constant 0.000000e+00 : f32
    %11 = vector.broadcast %cst_8 : f32 to vector<1x8x128xf32>
    %12 = arith.maximumf %4, %11 : vector<1x8x128xf32>
    %13 = arith.mulf %4, %6 : vector<1x8x128xf32>
    %14 = arith.subf %12, %13 : vector<1x8x128xf32>
    %15 = math.log1p %10 : vector<1x8x128xf32>
    %16 = arith.addf %14, %15 : vector<1x8x128xf32>
    %cst_9 = arith.constant 1.000000e+00 : f32
    %17 = vector.broadcast %cst_9 : f32 to vector<1x8x128xf32>
    %18 = arith.addf %17, %10 : vector<1x8x128xf32>
    %cst_10 = arith.constant 1.000000e+00 : f32
    %19 = vector.broadcast %cst_10 : f32 to vector<1x8x128xf32>
    %20 = arith.divf %19, %18 : vector<1x8x128xf32>
    %cst_11 = arith.constant 0.000000e+00 : f32
    %21 = vector.broadcast %cst_11 : f32 to vector<1x8x128xf32>
    %22 = arith.cmpf oge, %4, %21 : vector<1x8x128xf32>
    %23 = arith.mulf %10, %20 : vector<1x8x128xf32>
    %24 = arith.select %22, %20, %23 : vector<1x8x128xi1>, vector<1x8x128xf32>
    %c0_12 = arith.constant 0 : index
    %c0_13 = arith.constant 0 : index
    %c0_14 = arith.constant 0 : index
    %c0_15 = arith.constant 0 : index
    %25 = vector.load %arg4[%c0_12, %c0_13, %c0_14, %c0_15] : memref<1x4x8x128xf32, #tpu.memory_space<vmem>>, vector<1x1x8x128xf32>
    %26 = vector.shape_cast %25 : vector<1x1x8x128xf32> to vector<8x128xf32>
    %cst_16 = arith.constant dense<0.000000e+00> : vector<8x128xf32>
    %27 = vector.multi_reduction <add>, %16, %cst_16 [0] : vector<1x8x128xf32> to vector<8x128xf32>
    %28 = arith.addf %26, %27 : vector<8x128xf32>
    %c0_17 = arith.constant 0 : index
    %c0_18 = arith.constant 0 : index
    %c0_19 = arith.constant 0 : index
    %c0_20 = arith.constant 0 : index
    %29 = vector.load %arg4[%c0_17, %c0_18, %c0_19, %c0_20] : memref<1x4x8x128xf32, #tpu.memory_space<vmem>>, vector<1x1x8x128xf32>
    %30 = vector.shape_cast %29 : vector<1x1x8x128xf32> to vector<8x128xf32>
    %31 = vector.shape_cast %28 : vector<8x128xf32> to vector<1x1x8x128xf32>
    tpu.vector_store %arg4[%c0_17, %c0_18, %c0_19, %c0_20], %31 {strides = array<i32>} : memref<1x4x8x128xf32, #tpu.memory_space<vmem>>, vector<1x1x8x128xf32>,
    %c0_21 = arith.constant 0 : index
    %c1 = arith.constant 1 : index
    %c0_22 = arith.constant 0 : index
    %c0_23 = arith.constant 0 : index
    %32 = vector.load %arg4[%c0_21, %c1, %c0_22, %c0_23] : memref<1x4x8x128xf32, #tpu.memory_space<vmem>>, vector<1x1x8x128xf32>
    %33 = vector.shape_cast %32 : vector<1x1x8x128xf32> to vector<8x128xf32>
    %34 = arith.mulf %24, %6 : vector<1x8x128xf32>
    %cst_24 = arith.constant dense<0.000000e+00> : vector<8x128xf32>
    %35 = vector.multi_reduction <add>, %34, %cst_24 [0] : vector<1x8x128xf32> to vector<8x128xf32>
    %36 = arith.addf %33, %35 : vector<8x128xf32>
    %c0_25 = arith.constant 0 : index
    %c1_26 = arith.constant 1 : index
    %c0_27 = arith.constant 0 : index
    %c0_28 = arith.constant 0 : index
    %37 = vector.load %arg4[%c0_25, %c1_26, %c0_27, %c0_28] : memref<1x4x8x128xf32, #tpu.memory_space<vmem>>, vector<1x1x8x128xf32>
    %38 = vector.shape_cast %37 : vector<1x1x8x128xf32> to vector<8x128xf32>
    %39 = vector.shape_cast %36 : vector<8x128xf32> to vector<1x1x8x128xf32>
    tpu.vector_store %arg4[%c0_25, %c1_26, %c0_27, %c0_28], %39 {strides = array<i32>} : memref<1x4x8x128xf32, #tpu.memory_space<vmem>>, vector<1x1x8x128xf32>,
    %c0_29 = arith.constant 0 : index
    %c2 = arith.constant 2 : index
    %c0_30 = arith.constant 0 : index
    %c0_31 = arith.constant 0 : index
    %40 = vector.load %arg4[%c0_29, %c2, %c0_30, %c0_31] : memref<1x4x8x128xf32, #tpu.memory_space<vmem>>, vector<1x1x8x128xf32>
    %41 = vector.shape_cast %40 : vector<1x1x8x128xf32> to vector<8x128xf32>
    %cst_32 = arith.constant dense<0.000000e+00> : vector<8x128xf32>
    %42 = vector.multi_reduction <add>, %24, %cst_32 [0] : vector<1x8x128xf32> to vector<8x128xf32>
    %43 = arith.addf %41, %42 : vector<8x128xf32>
    %c0_33 = arith.constant 0 : index
    %c2_34 = arith.constant 2 : index
    %c0_35 = arith.constant 0 : index
    %c0_36 = arith.constant 0 : index
    %44 = vector.load %arg4[%c0_33, %c2_34, %c0_35, %c0_36] : memref<1x4x8x128xf32, #tpu.memory_space<vmem>>, vector<1x1x8x128xf32>
    %45 = vector.shape_cast %44 : vector<1x1x8x128xf32> to vector<8x128xf32>
    %46 = vector.shape_cast %43 : vector<8x128xf32> to vector<1x1x8x128xf32>
    tpu.vector_store %arg4[%c0_33, %c2_34, %c0_35, %c0_36], %46 {strides = array<i32>} : memref<1x4x8x128xf32, #tpu.memory_space<vmem>>, vector<1x1x8x128xf32>,
    %c0_37 = arith.constant 0 : index
    %c3 = arith.constant 3 : index
    %c0_38 = arith.constant 0 : index
    %c0_39 = arith.constant 0 : index
    %47 = vector.load %arg4[%c0_37, %c3, %c0_38, %c0_39] : memref<1x4x8x128xf32, #tpu.memory_space<vmem>>, vector<1x1x8x128xf32>
    %48 = vector.shape_cast %47 : vector<1x1x8x128xf32> to vector<8x128xf32>
    %cst_40 = arith.constant dense<0.000000e+00> : vector<8x128xf32>
    %49 = vector.multi_reduction <add>, %6, %cst_40 [0] : vector<1x8x128xf32> to vector<8x128xf32>
    %50 = arith.addf %48, %49 : vector<8x128xf32>
    %c0_41 = arith.constant 0 : index
    %c3_42 = arith.constant 3 : index
    %c0_43 = arith.constant 0 : index
    %c0_44 = arith.constant 0 : index
    %51 = vector.load %arg4[%c0_41, %c3_42, %c0_43, %c0_44] : memref<1x4x8x128xf32, #tpu.memory_space<vmem>>, vector<1x1x8x128xf32>
    %52 = vector.shape_cast %51 : vector<1x1x8x128xf32> to vector<8x128xf32>
    %53 = vector.shape_cast %50 : vector<8x128xf32> to vector<1x1x8x128xf32>
    tpu.vector_store %arg4[%c0_41, %c3_42, %c0_43, %c0_44], %53 {strides = array<i32>} : memref<1x4x8x128xf32, #tpu.memory_space<vmem>>, vector<1x1x8x128xf32>,
    return
  }
  func.func @transform_0(%arg0: i32, %arg1: i32) -> (i32, i32, i32, i32) {
    %c0_i32 = arith.constant 0 : i32
    %c0_i32_0 = arith.constant 0 : i32
    %c0_i32_1 = arith.constant 0 : i32
    return %arg0, %arg1, %c0_i32, %c0_i32_0 : i32, i32, i32, i32
  }
  func.func @transform_1(%arg0: i32, %arg1: i32) -> (i32, i32, i32, i32) {
    %c0_i32 = arith.constant 0 : i32
    %c0_i32_0 = arith.constant 0 : i32
    %c0_i32_1 = arith.constant 0 : i32
    return %arg0, %arg1, %c0_i32, %c0_i32_0 : i32, i32, i32, i32
  }
  func.func @transform_2(%arg0: i32, %arg1: i32) -> (i32, i32, i32, i32) {
    %c0_i32 = arith.constant 0 : i32
    %c0_i32_0 = arith.constant 0 : i32
    %c0_i32_1 = arith.constant 0 : i32
    %c0_i32_2 = arith.constant 0 : i32
    return %arg0, %c0_i32, %c0_i32_0, %c0_i32_1 : i32, i32, i32, i32
  }
}

</mosaic_0001>

<bundles_post_ra>
// kernel: _lambda_.1
= control target key start
LH: loop header
LB: loop body
LE: loop exit
PB: predicated region body
PF: predicated region fallthrough
CT: control target
= control target key end

     0   :  { %s414_s9 = smov 0   ;;  %s416_s10 = smov 0   ;;  %s450_s0 = inlined_call_operand.vmem [shape: f32[2,1,8,128], index: 0, kind: input, shape index: {}]   ;;  %s451_s1 = inlined_call_operand.vmem [shape: f32[2,1,8,128], index: 1, kind: input, shape index: {}]   ;;  %s452_s2 = inlined_call_operand.vmem [shape: f32[2,4,8,128], index: 2, kind: output, shape index: {}]  }
   0x1   :  { %s418_s11 = smov 0  }
   0x2 LB: > { %s24_s12 = sadd.s32 1, %s393_s10  ;;  %p330_p0 = scmp.ge.s32.totalorder %s397_s11, 1  ;;  %s397_s11 = sphi %s418_s11, %s12_s11   ;;  %s393_s10 = sphi %s416_s10, %s454_s10   ;;  %s389_s9 = sphi %s414_s9, %s453_s9  }
   0x3   : > { %p26_p1 = scmp.ge.s32.totalorder %s24_s12, 2  ;;  %p142_p2 = scmp.lt.s32.totalorder %s397_s11, 3 }
   0x5   : > { %s456_s12 = smov (%p26_p1, %s24_s12), 0  ;;  %p143_p3 = pnand %p330_p0, %p142_p2 }
   0x6   : > { %p173_p4 = scmp.lt.s32.totalorder (!%p143_p3), %s389_s9, 1 }
   0x7   : > { %146 = sbr.rel (%p143_p3) target bundleno = 55 (0x37), region = 28 }
   0xe   : > { %s458_s9 = smov (!%p173_p4, %s389_s9), 1 }
   0xf   : > { %s343_s13 = sshll.u32 %s458_s9, 5  ;;  %s331_s14 = sshll.u32 %s458_s9, 3 }
  0x10   : > { %s179_s17 = scalar_lea.vmem %s450_s0, %s331_s14  ;;  %s186_s20 = scalar_lea.vmem %s451_s1, %s331_s14 }
  0x11   : > { %v200_v0 = vld [vmem:[%s179_s17] sm:$0xff]  ;;  %s191_s23 = scalar_lea.vmem %s452_s2, %s343_s13 }
  0x12   : > { %v201_v1 = vld [vmem:[%s186_s20] sm:$0xff]  ;;  %v202_v2 = vand.u32 2147483647, %v200_v0  ;;  %v206_v9 = vmax.f32 %v200_v0, 0.0  ;;  %vm222_vm1 = vcmp.ge.f32.partialorder %v200_v0, 0.0 }
  0x13   : > { %340 = vst [vmem:[%s191_s23 + $0x18] sm:$0xff] %v201_v1  ;;  %v207_v10 = vmul.f32 %v201_v1, %v200_v0 }
  0x14   : > { %v203_v3 = vsub.f32 0.0, %v202_v2 }
  0x15   : > { %v208_v14 = vsub.f32 %v206_v9, %v207_v10 }
  0x16   : > { %v204_v4 = vmul.f32 1.442695, %v203_v3 }
  0x18   : > { %369 = vpow2.f32 %v204_v4 }
  0x22   : > { %v370_v5 = vpop.eup %369 }
  0x23   : > { %v209_v6 = vadd.f32 1.0, %v370_v5  ;;  %v212_v7 = vmul.f32 -0.5, %v370_v5  ;;  %v215_v11 = vand.u32 2147483647, %v370_v5 }
  0x25   : > { %371 = vlog2.f32 %v209_v6  ;;  %v213_v8 = vadd.f32 1.0, %v212_v7  ;;  %vm216_vm0 = vcmp.lt.f32.partialorder %v215_v11, 0.0004427343 }
  0x26   : > { %373 = vrcp.f32 %v209_v6 }
  0x27   : > { %v214_v12 = vmul.f32 %v370_v5, %v213_v8 }
  0x2f   : > { %v372_v13 = vpop.eup %371 }
  0x30   : > { %v374_v15 = vpop.eup %373  ;;  %v211_v16 = vmul.f32 0.6931472, %v372_v13 }
  0x31   : > { %v223_v17 = vmul.f32 %v374_v15, %v370_v5 }
  0x32   : > { %v217_v18 = vsel %vm216_vm0, %v214_v12, %v211_v16 }
  0x33   : > { %v218_v19 = vadd.f32 %v217_v18, %v208_v14  ;;  %v224_v20 = vsel %vm222_vm1, %v374_v15, %v223_v17 }
  0x34   : > { %v231_v21 = vmul.f32 %v224_v20, %v201_v1  ;;  %338 = vst [vmem:[%s191_s23 + $0x10] sm:$0xff] %v224_v20 }
  0x35   : > { %228 = vst [vmem:[%s191_s23] sm:$0xff] %v218_v19 }
  0x36   : > { %336 = vst [vmem:[%s191_s23 + $0x8] sm:$0xff] %v231_v21 }
  0x37 PF: > { %s12_s11 = sadd.s32 1, %s397_s11   ;;  %s453_s9 = smov %s393_s10 }
  0x38   : > { %p9_p5 = scmp.ge.s32.totalorder %s12_s11, 4   ;;  %s454_s10 = smov %s456_s12 }
  0x3a   :  { %11 = sbr.rel (!%p9_p5) target bundleno = 2 (0x2), region = 68 }

</bundles_post_ra>
